<compile_context>
chip_gen: v7x
topology: tpu7x:2x2x1
jax: 0.10.0
libtpu: 0.0.40
codegen_flags: <defaults>
</compile_context>

<pallas_src>
import functools

import jax
import jax.numpy as jnp
from jax import lax
from jax.experimental import pallas as pl
from jax.experimental.pallas import tpu as pltpu


def lstm_kernel(x_ref, h0_ref, c0_ref, wx_ref, wh_ref, b_ref,
                out_ref, h_scr, c_scr, gx_scr, *, gate_dtype, unroll):
    t_blk, b_blk, _ = x_ref.shape
    H = h_scr.shape[-1]

    # A new batch block begins whenever the inner, sequential time axis
    # restarts: re-initialize the recurrent state from h0/c0.
    # (Relies on grid=(batch, time) with time innermost + "arbitrary".)
    @pl.when(pl.program_id(1) == 0)
    def _():
        h_scr[...] = h0_ref[...].astype(jnp.float32)
        c_scr[...] = c0_ref[...].astype(jnp.float32)

    # ---- Pre-pass (parallel over time): gates_x = x @ Wx + b for the whole
    # time block as one tall-M matmul ((t_blk*b_blk, I) x (I, 4H)).  Stored in
    # bf16: it feeds straight into sigmoid/tanh, so f32 storage is wasted VMEM.
    x_blk = x_ref[...].reshape(t_blk * b_blk, -1).astype(jnp.bfloat16)
    gx = (jnp.dot(x_blk, wx_ref[...], preferred_element_type=jnp.float32)
          + b_ref[...])
    gx_scr[...] = gx.reshape(t_blk, b_blk, 4 * H).astype(gx_scr.dtype)

    wh = wh_ref[...]  # bf16 (H, 4H), stays resident across the time block

    # ---- Sequential recurrence: only h @ Wh remains per timestep.
    # h/c carried in registers across the (partially) unrolled loop in f32.
    def step(t, carry):
        h_prev, c_prev = carry
        # TODO(synk): on v7x, fuse this add into the MXU MRB accumulation path
        # (matmul_push_rhs / matmul_acc_lhs, RHS held resident per time block)
        # if the bundle shows vadd pressure on the serial path.
        gates = gx_scr[t].astype(jnp.float32) + jnp.dot(
            h_prev.astype(jnp.bfloat16), wh, preferred_element_type=jnp.float32)
        # Gate packing order in the fused weights: [i, f, g, o].
        # gate_dtype = bf16 on v6e/v7x (bf16 EUP, ~2x transcendental throughput),
        # f32 on v5e (no bf16 VPU/EUP).
        ga = gates.astype(gate_dtype)
        i_t = jax.nn.sigmoid(ga[:, 0 * H:1 * H]).astype(jnp.float32)
        f_t = jax.nn.sigmoid(ga[:, 1 * H:2 * H]).astype(jnp.float32)
        g_t = jnp.tanh(ga[:, 2 * H:3 * H]).astype(jnp.float32)
        o_t = jax.nn.sigmoid(ga[:, 3 * H:4 * H]).astype(jnp.float32)
        c_new = f_t * c_prev + i_t * g_t
        h_new = o_t * jnp.tanh(c_new)
        # TODO(synk): if H is not a multiple of 128 at real sizes, pad H (or
        # flatten to a (t_blk, b_blk*H) slab) so this store is lane-dense.
        out_ref[t] = h_new.astype(out_ref.dtype)
        return h_new, c_new

    h_fin, c_fin = lax.fori_loop(0, t_blk, step,
                                 (h_scr[...], c_scr[...]), unroll=unroll)
    h_scr[...] = h_fin
    c_scr[...] = c_fin


def _largest_divisor_leq(n, cap):
    cap = max(1, min(n, cap))
    for d in range(cap, 0, -1):
        if n % d == 0:
            return d
    return 1


def _vmem_bytes(t_blk, b_blk, I, H, x_bytes, out_bytes):
    """Scoped-VMEM estimate for one grid step (all buffers)."""
    x_slab = 2 * t_blk * b_blk * I * x_bytes                  # input, double-buffered
    out_slab = 2 * t_blk * b_blk * H * out_bytes              # output, double-buffered
    weights = (I + H) * 4 * H * 2                             # bf16 Wx+Wh, single-buffered
    bias = 4 * H * 4                                          # f32 bias, single-buffered
    hc0 = 2 * b_blk * H * 4                                   # h0/c0, single-buffered
    scratch = 2 * b_blk * H * 4 + t_blk * b_blk * 4 * H * 2   # h,c (f32) + gx (bf16)
    return x_slab + out_slab + weights + bias + hc0 + scratch


def lstm_forward(x, h0, c0, wx, wh, b, *, t_blk=None, b_blk=None,
                 gate_dtype=jnp.float32, unroll=None,
                 vmem_budget_bytes=40 * 1024 * 1024):
    """x: (S, B, I); h0/c0: (B, H); wx: (I, 4H); wh: (H, 4H); b: (1, 4H)."""
    S, B, I = x.shape
    H = h0.shape[1]
    assert wx.shape == (I, 4 * H) and wh.shape == (H, 4 * H) and b.shape == (1, 4 * H)

    out_dtype = x.dtype
    out_bytes = jnp.dtype(out_dtype).itemsize
    x_bytes = jnp.dtype(x.dtype).itemsize

    # ---- Batch block: multiple of 8 (layout-preserving reshape, MXU M-fill),
    # <= 256, and strictly < B when B allows so grid[0] >= 2 (v7x dual-TC).
    if b_blk is None:
        divs = [d for d in range(1, B + 1) if B % d == 0]
        pref = [d for d in divs if d % 8 == 0 and d <= 256 and d < B]
        b_blk = max(pref) if pref else _largest_divisor_leq(B, 256)
    assert B % b_blk == 0

    # ---- Time block: largest divisor of S <= 32 that fits the VMEM budget
    # (NOT gcd(S, 32), which collapses to 1 for odd/prime S).
    if t_blk is None:
        t_blk = _largest_divisor_leq(S, 32)
        while (t_blk > 1 and
               _vmem_bytes(t_blk, b_blk, I, H, x_bytes, out_bytes)
               > vmem_budget_bytes):
            t_blk = _largest_divisor_leq(S, t_blk - 1)
    assert S % t_blk == 0

    if unroll is None:
        # Full unroll only for short time blocks; partial unroll keeps live
        # ranges (one (b_blk, 4H) f32 gates temp per step) bounded at real sizes.
        unroll = True if t_blk <= 8 else 8

    # bf16 weights: MXU-native operands, half the DMA/VMEM footprint.
    # Accumulation stays f32 (preferred_element_type) inside the kernel.
    wx = wx.astype(jnp.bfloat16)
    wh = wh.astype(jnp.bfloat16)

    need = _vmem_bytes(t_blk, b_blk, I, H, x_bytes, out_bytes)
    vmem_limit = max(32 << 20, min(int(need * 1.25) + (2 << 20), 120 << 20))

    grid = (B // b_blk, S // t_blk)
    kernel = functools.partial(lstm_kernel, gate_dtype=gate_dtype, unroll=unroll)

    return pl.pallas_call(
        kernel,
        out_shape=jax.ShapeDtypeStruct((S, B, H), out_dtype),
        grid_spec=pltpu.PrefetchScalarGridSpec(
            num_scalar_prefetch=0,
            grid=grid,
            in_specs=[
                # x slab: streamed, keep default double-buffering.
                pl.BlockSpec((t_blk, b_blk, I), lambda bb, tt: (tt, bb, 0)),
                # Time-invariant operands: single-buffered (their block index
                # never changes across the inner time axis, so a second buffer
                # is pure wasted VMEM).
                pl.BlockSpec((b_blk, H), lambda bb, tt: (bb, 0),
                             pipeline_mode=pl.Buffered(1)),                    # h0
                pl.BlockSpec((b_blk, H), lambda bb, tt: (bb, 0),
                             pipeline_mode=pl.Buffered(1)),                    # c0
                pl.BlockSpec((I, 4 * H), lambda bb, tt: (0, 0),
                             pipeline_mode=pl.Buffered(1)),                    # Wx [i,f,g,o]
                pl.BlockSpec((H, 4 * H), lambda bb, tt: (0, 0),
                             pipeline_mode=pl.Buffered(1)),                    # Wh [i,f,g,o]
                pl.BlockSpec((1, 4 * H), lambda bb, tt: (0, 0),
                             pipeline_mode=pl.Buffered(1)),                    # bias
            ],
            out_specs=pl.BlockSpec((t_blk, b_blk, H), lambda bb, tt: (tt, bb, 0)),
            scratch_shapes=[
                pltpu.VMEM((b_blk, H), jnp.float32),                 # h state (f32)
                pltpu.VMEM((b_blk, H), jnp.float32),                 # c state (f32)
                pltpu.VMEM((t_blk, b_blk, 4 * H), jnp.bfloat16),     # x-projection (bf16)
            ],
        ),
        compiler_params=pltpu.CompilerParams(
            # Batch blocks are independent (megacore-shardable); time is the
            # sequential recurrence axis.
            dimension_semantics=("parallel", "arbitrary"),
            vmem_limit_bytes=vmem_limit),
    )(x, h0, c0, wx, wh, b)


def lstm_reference(x, h0, c0, wx, wh, b, *, dot_dtype=jnp.bfloat16,
                   gx_dtype=jnp.bfloat16, gate_dtype=jnp.float32):
    """Pure-JAX reference mirroring the PyTorch forward loop and the kernel's
    numerics (bf16 matmul operands, f32 accumulation, bf16-stored x-projection,
    gate_dtype transcendentals, f32 state math)."""
    S = x.shape[0]
    H = h0.shape[1]
    wx_c = wx.astype(dot_dtype)
    wh_c = wh.astype(dot_dtype)
    h, c = h0, c0
    outs = []
    for t in range(S):
        gx = (jnp.dot(x[t].astype(dot_dtype), wx_c,
                      preferred_element_type=jnp.float32) + b).astype(gx_dtype)
        gates = gx.astype(jnp.float32) + jnp.dot(
            h.astype(dot_dtype), wh_c, preferred_element_type=jnp.float32)
        ga = gates.astype(gate_dtype)
        i_t = jax.nn.sigmoid(ga[:, 0 * H:1 * H]).astype(jnp.float32)
        f_t = jax.nn.sigmoid(ga[:, 1 * H:2 * H]).astype(jnp.float32)
        g_t = jnp.tanh(ga[:, 2 * H:3 * H]).astype(jnp.float32)
        o_t = jax.nn.sigmoid(ga[:, 3 * H:4 * H]).astype(jnp.float32)
        c = f_t * c + i_t * g_t
        h = o_t * jnp.tanh(c)
        outs.append(h[None])
    return jnp.concatenate(outs, axis=0)


if __name__ == "__main__":
    seq_len, batch, input_size, hidden_size = 8, 8, 16, 32

    key = jax.random.PRNGKey(0)
    kx, kh, kc, kwii, kwhi, kwif, kwhf, kwio, kwho, kwig, kwhg = jax.random.split(key, 11)

    # Deterministic parameter init mimicking torch.randn / torch.zeros in __init__.
    W_ii = jax.random.normal(kwii, (input_size, hidden_size), jnp.float32)
    W_hi = jax.random.normal(kwhi, (hidden_size, hidden_size), jnp.float32)
    b_i = jnp.zeros((hidden_size,), jnp.float32)
    W_if = jax.random.normal(kwif, (input_size, hidden_size), jnp.float32)
    W_hf = jax.random.normal(kwhf, (hidden_size, hidden_size), jnp.float32)
    b_f = jnp.zeros((hidden_size,), jnp.float32)
    W_io = jax.random.normal(kwio, (input_size, hidden_size), jnp.float32)
    W_ho = jax.random.normal(kwho, (hidden_size, hidden_size), jnp.float32)
    b_o = jnp.zeros((hidden_size,), jnp.float32)
    W_ig = jax.random.normal(kwig, (input_size, hidden_size), jnp.float32)
    W_hg = jax.random.normal(kwhg, (hidden_size, hidden_size), jnp.float32)
    b_g = jnp.zeros((hidden_size,), jnp.float32)

    # Pack gates as [i, f, g, o] along the output dim for fused matmuls.
    wx = jnp.concatenate([W_ii, W_if, W_ig, W_io], axis=1)      # (I, 4H)
    wh = jnp.concatenate([W_hi, W_hf, W_hg, W_ho], axis=1)      # (H, 4H)
    b = jnp.concatenate([b_i, b_f, b_g, b_o], axis=0)[None, :]  # (1, 4H)

    x = jax.random.normal(kx, (seq_len, batch, input_size), jnp.float32)
    h0 = jax.random.normal(kh, (batch, hidden_size), jnp.float32)
    c0 = jax.random.normal(kc, (batch, hidden_size), jnp.float32)

    # bf16 EUP gate path on v6e/v7x; f32 gates on v5e (no bf16 VPU/EUP).
    gate_dtype = jnp.float32
    try:
        kind = jax.devices()[0].device_kind.lower()
        if ("v6" in kind) or ("v7" in kind):
            gate_dtype = jnp.bfloat16
    except Exception:
        gate_dtype = jnp.float32

    out = lstm_forward(x, h0, c0, wx, wh, b, gate_dtype=gate_dtype)
    out = jax.block_until_ready(out)

    # Reference mirroring the kernel's numerics.
    ref = lstm_reference(x, h0, c0, wx, wh, b, gate_dtype=gate_dtype)
    tol = 3e-2 if gate_dtype == jnp.bfloat16 else 2e-3
    assert out.shape == (seq_len, batch, hidden_size)
    assert jnp.allclose(out, ref, atol=tol, rtol=tol), "mismatch vs reference"

    print("KERNEL_OK")
</pallas_src>

<mosaic_0001>
module attributes {stable_mosaic.version = 11 : i64} {
  func.func @lstm_kernel(%arg0: i32, %arg1: i32, %arg2: memref<8x8x16xf32, #tpu.memory_space<vmem>>, %arg3: memref<8x32xf32, #tpu.memory_space<vmem>>, %arg4: memref<8x32xf32, #tpu.memory_space<vmem>>, %arg5: memref<16x128xbf16, #tpu.memory_space<vmem>>, %arg6: memref<32x128xbf16, #tpu.memory_space<vmem>>, %arg7: memref<1x128xf32, #tpu.memory_space<vmem>>, %arg8: memref<8x8x32xf32, #tpu.memory_space<vmem>>, %arg9: memref<8x32xf32, #tpu.memory_space<vmem>>, %arg10: memref<8x32xf32, #tpu.memory_space<vmem>>, %arg11: memref<8x8x128xbf16, #tpu.memory_space<vmem>>) attributes {dimension_semantics = [#tpu.dimension_semantics<parallel>, #tpu.dimension_semantics<arbitrary>], iteration_bounds = array<i64: 1, 1>, scalar_prefetch = 0 : i64, scratch_operands = 3 : i64, tpu.core_type = #tpu.core_type<tc>, window_params = [{transform_indices = @transform_0, window_bounds = array<i64: 8, 8, 16>}, {pipeline_mode = #tpu.pipeline_mode<synchronous>, transform_indices = @transform_1, window_bounds = array<i64: 8, 32>}, {pipeline_mode = #tpu.pipeline_mode<synchronous>, transform_indices = @transform_2, window_bounds = array<i64: 8, 32>}, {pipeline_mode = #tpu.pipeline_mode<synchronous>, transform_indices = @transform_3, window_bounds = array<i64: 16, 128>}, {pipeline_mode = #tpu.pipeline_mode<synchronous>, transform_indices = @transform_4, window_bounds = array<i64: 32, 128>}, {pipeline_mode = #tpu.pipeline_mode<synchronous>, transform_indices = @transform_5, window_bounds = array<i64: 1, 128>}, {transform_indices = @transform_6, window_bounds = array<i64: 8, 8, 32>}]} {
    %c0_i32 = arith.constant 0 : i32
    %0 = arith.cmpi eq, %arg1, %c0_i32 : i32
    %1 = arith.extui %0 : i1 to i32
    %c0_i32_0 = arith.constant 0 : i32
    %2 = arith.cmpi ne, %1, %c0_i32_0 : i32
    scf.if %2 {
      %c0_85 = arith.constant 0 : index
      %c0_86 = arith.constant 0 : index
      %307 = vector.load %arg3[%c0_85, %c0_86] : memref<8x32xf32, #tpu.memory_space<vmem>>, vector<8x32xf32>
      %c0_87 = arith.constant 0 : index
      %c0_88 = arith.constant 0 : index
      %308 = vector.load %arg9[%c0_87, %c0_88] : memref<8x32xf32, #tpu.memory_space<vmem>>, vector<8x32xf32>
      tpu.vector_store %arg9[%c0_87, %c0_88], %307 {strides = array<i32>} : memref<8x32xf32, #tpu.memory_space<vmem>>, vector<8x32xf32>,
      %c0_89 = arith.constant 0 : index
      %c0_90 = arith.constant 0 : index
      %309 = vector.load %arg4[%c0_89, %c0_90] : memref<8x32xf32, #tpu.memory_space<vmem>>, vector<8x32xf32>
      %c0_91 = arith.constant 0 : index
      %c0_92 = arith.constant 0 : index
      %310 = vector.load %arg10[%c0_91, %c0_92] : memref<8x32xf32, #tpu.memory_space<vmem>>, vector<8x32xf32>
      tpu.vector_store %arg10[%c0_91, %c0_92], %309 {strides = array<i32>} : memref<8x32xf32, #tpu.memory_space<vmem>>, vector<8x32xf32>,
    } else {
    }
    %c0 = arith.constant 0 : index
    %c0_1 = arith.constant 0 : index
    %c0_2 = arith.constant 0 : index
    %3 = vector.load %arg2[%c0, %c0_1, %c0_2] : memref<8x8x16xf32, #tpu.memory_space<vmem>>, vector<8x8x16xf32>
    %4 = vector.shape_cast %3 : vector<8x8x16xf32> to vector<64x16xf32>
    %5 = arith.truncf %4 : vector<64x16xf32> to vector<64x16xbf16>
    %c0_3 = arith.constant 0 : index
    %c0_4 = arith.constant 0 : index
    %6 = vector.load %arg5[%c0_3, %c0_4] : memref<16x128xbf16, #tpu.memory_space<vmem>>, vector<16x128xbf16>
    %cst = arith.constant dense<0.000000e+00> : vector<64x128xf32>
    %7 = tpu.matmul %5, %6, %cst {dimension_numbers = #tpu.dot_dimension_numbers<[1], [0], [0], [1], [0, 0, 1, 1], [], []>} : vector<64x16xbf16>, vector<16x128xbf16>, vector<64x128xf32> -> vector<64x128xf32>
    %c0_5 = arith.constant 0 : index
    %c0_6 = arith.constant 0 : index
    %8 = vector.load %arg7[%c0_5, %c0_6] : memref<1x128xf32, #tpu.memory_space<vmem>>, vector<1x128xf32>
    %9 = vector.broadcast %8 : vector<1x128xf32> to vector<64x128xf32>
    %10 = arith.addf %7, %9 : vector<64x128xf32>
    %11 = vector.shape_cast %10 : vector<64x128xf32> to vector<8x8x128xf32>
    %12 = arith.truncf %11 : vector<8x8x128xf32> to vector<8x8x128xbf16>
    %c0_7 = arith.constant 0 : index
    %c0_8 = arith.constant 0 : index
    %c0_9 = arith.constant 0 : index
    %13 = vector.load %arg11[%c0_7, %c0_8, %c0_9] : memref<8x8x128xbf16, #tpu.memory_space<vmem>>, vector<8x8x128xbf16>
    tpu.vector_store %arg11[%c0_7, %c0_8, %c0_9], %12 {strides = array<i32>} : memref<8x8x128xbf16, #tpu.memory_space<vmem>>, vector<8x8x128xbf16>,
    %c0_10 = arith.constant 0 : index
    %c0_11 = arith.constant 0 : index
    %14 = vector.load %arg6[%c0_10, %c0_11] : memref<32x128xbf16, #tpu.memory_space<vmem>>, vector<32x128xbf16>
    %c0_12 = arith.constant 0 : index
    %c0_13 = arith.constant 0 : index
    %15 = vector.load %arg9[%c0_12, %c0_13] : memref<8x32xf32, #tpu.memory_space<vmem>>, vector<8x32xf32>
    %c0_14 = arith.constant 0 : index
    %c0_15 = arith.constant 0 : index
    %16 = vector.load %arg10[%c0_14, %c0_15] : memref<8x32xf32, #tpu.memory_space<vmem>>, vector<8x32xf32>
    %c0_i32_16 = arith.constant 0 : i32
    %17 = arith.index_cast %c0_i32_16 : i32 to index
    %c0_17 = arith.constant 0 : index
    %c0_18 = arith.constant 0 : index
    %18 = vector.load %arg11[%17, %c0_17, %c0_18] : memref<8x8x128xbf16, #tpu.memory_space<vmem>>, vector<1x8x128xbf16>
    %19 = vector.shape_cast %18 : vector<1x8x128xbf16> to vector<8x128xbf16>
    %20 = arith.extf %19 : vector<8x128xbf16> to vector<8x128xf32>
    %21 = arith.truncf %15 : vector<8x32xf32> to vector<8x32xbf16>
    %cst_19 = arith.constant dense<0.000000e+00> : vector<8x128xf32>
    %22 = tpu.matmul %21, %14, %cst_19 {dimension_numbers = #tpu.dot_dimension_numbers<[1], [0], [0], [1], [0, 0, 1, 1], [], []>} : vector<8x32xbf16>, vector<32x128xbf16>, vector<8x128xf32> -> vector<8x128xf32>
    %23 = arith.addf %20, %22 : vector<8x128xf32>
    %24 = vector.extract_strided_slice %23 {offsets = [0, 0], sizes = [8, 32], strides = [1, 1]} : vector<8x128xf32> to vector<8x32xf32>
    %25 = arith.negf %24 : vector<8x32xf32>
    %26 = math.exp %25 : vector<8x32xf32>
    %cst_20 = arith.constant 1.000000e+00 : f32
    %27 = vector.broadcast %cst_20 : f32 to vector<8x32xf32>
    %28 = arith.addf %27, %26 : vector<8x32xf32>
    %29 = arith.divf %27, %28 : vector<8x32xf32>
    %30 = vector.extract_strided_slice %23 {offsets = [0, 32], sizes = [8, 32], strides = [1, 1]} : vector<8x128xf32> to vector<8x32xf32>
    %31 = arith.negf %30 : vector<8x32xf32>
    %32 = math.exp %31 : vector<8x32xf32>
    %cst_21 = arith.constant 1.000000e+00 : f32
    %33 = vector.broadcast %cst_21 : f32 to vector<8x32xf32>
    %34 = arith.addf %33, %32 : vector<8x32xf32>
    %35 = arith.divf %33, %34 : vector<8x32xf32>
    %36 = vector.extract_strided_slice %23 {offsets = [0, 64], sizes = [8, 32], strides = [1, 1]} : vector<8x128xf32> to vector<8x32xf32>
    %37 = math.tanh %36 : vector<8x32xf32>
    %38 = vector.extract_strided_slice %23 {offsets = [0, 96], sizes = [8, 32], strides = [1, 1]} : vector<8x128xf32> to vector<8x32xf32>
    %39 = arith.negf %38 : vector<8x32xf32>
    %40 = math.exp %39 : vector<8x32xf32>
    %cst_22 = arith.constant 1.000000e+00 : f32
    %41 = vector.broadcast %cst_22 : f32 to vector<8x32xf32>
    %42 = arith.addf %41, %40 : vector<8x32xf32>
    %43 = arith.divf %41, %42 : vector<8x32xf32>
    %44 = arith.mulf %35, %16 : vector<8x32xf32>
    %45 = arith.mulf %29, %37 : vector<8x32xf32>
    %46 = arith.addf %44, %45 : vector<8x32xf32>
    %47 = math.tanh %46 : vector<8x32xf32>
    %48 = arith.mulf %43, %47 : vector<8x32xf32>
    %49 = arith.index_cast %c0_i32_16 : i32 to index
    %c0_23 = arith.constant 0 : index
    %c0_24 = arith.constant 0 : index
    %50 = vector.load %arg8[%49, %c0_23, %c0_24] : memref<8x8x32xf32, #tpu.memory_space<vmem>>, vector<1x8x32xf32>
    %51 = vector.shape_cast %50 : vector<1x8x32xf32> to vector<8x32xf32>
    %52 = vector.shape_cast %48 : vector<8x32xf32> to vector<1x8x32xf32>
    tpu.vector_store %arg8[%49, %c0_23, %c0_24], %52 {strides = array<i32>} : memref<8x8x32xf32, #tpu.memory_space<vmem>>, vector<1x8x32xf32>,
    %c1_i32 = arith.constant 1 : i32
    %53 = arith.index_cast %c1_i32 : i32 to index
    %c0_25 = arith.constant 0 : index
    %c0_26 = arith.constant 0 : index
    %54 = vector.load %arg11[%53, %c0_25, %c0_26] : memref<8x8x128xbf16, #tpu.memory_space<vmem>>, vector<1x8x128xbf16>
    %55 = vector.shape_cast %54 : vector<1x8x128xbf16> to vector<8x128xbf16>
    %56 = arith.extf %55 : vector<8x128xbf16> to vector<8x128xf32>
    %57 = arith.truncf %48 : vector<8x32xf32> to vector<8x32xbf16>
    %cst_27 = arith.constant dense<0.000000e+00> : vector<8x128xf32>
    %58 = tpu.matmul %57, %14, %cst_27 {dimension_numbers = #tpu.dot_dimension_numbers<[1], [0], [0], [1], [0, 0, 1, 1], [], []>} : vector<8x32xbf16>, vector<32x128xbf16>, vector<8x128xf32> -> vector<8x128xf32>
    %59 = arith.addf %56, %58 : vector<8x128xf32>
    %60 = vector.extract_strided_slice %59 {offsets = [0, 0], sizes = [8, 32], strides = [1, 1]} : vector<8x128xf32> to vector<8x32xf32>
    %61 = arith.negf %60 : vector<8x32xf32>
    %62 = math.exp %61 : vector<8x32xf32>
    %cst_28 = arith.constant 1.000000e+00 : f32
    %63 = vector.broadcast %cst_28 : f32 to vector<8x32xf32>
    %64 = arith.addf %63, %62 : vector<8x32xf32>
    %65 = arith.divf %63, %64 : vector<8x32xf32>
    %66 = vector.extract_strided_slice %59 {offsets = [0, 32], sizes = [8, 32], strides = [1, 1]} : vector<8x128xf32> to vector<8x32xf32>
    %67 = arith.negf %66 : vector<8x32xf32>
    %68 = math.exp %67 : vector<8x32xf32>
    %cst_29 = arith.constant 1.000000e+00 : f32
    %69 = vector.broadcast %cst_29 : f32 to vector<8x32xf32>
    %70 = arith.addf %69, %68 : vector<8x32xf32>
    %71 = arith.divf %69, %70 : vector<8x32xf32>
    %72 = vector.extract_strided_slice %59 {offsets = [0, 64], sizes = [8, 32], strides = [1, 1]} : vector<8x128xf32> to vector<8x32xf32>
    %73 = math.tanh %72 : vector<8x32xf32>
    %74 = vector.extract_strided_slice %59 {offsets = [0, 96], sizes = [8, 32], strides = [1, 1]} : vector<8x128xf32> to vector<8x32xf32>
    %75 = arith.negf %74 : vector<8x32xf32>
    %76 = math.exp %75 : vector<8x32xf32>
    %cst_30 = arith.constant 1.000000e+00 : f32
    %77 = vector.broadcast %cst_30 : f32 to vector<8x32xf32>
    %78 = arith.addf %77, %76 : vector<8x32xf32>
    %79 = arith.divf %77, %78 : vector<8x32xf32>
    %80 = arith.mulf %71, %46 : vector<8x32xf32>
    %81 = arith.mulf %65, %73 : vector<8x32xf32>
    %82 = arith.addf %80, %81 : vector<8x32xf32>
    %83 = math.tanh %82 : vector<8x32xf32>
    %84 = arith.mulf %79, %83 : vector<8x32xf32>
    %85 = arith.index_cast %c1_i32 : i32 to index
    %c0_31 = arith.constant 0 : index
    %c0_32 = arith.constant 0 : index
    %86 = vector.load %arg8[%85, %c0_31, %c0_32] : memref<8x8x32xf32, #tpu.memory_space<vmem>>, vector<1x8x32xf32>
    %87 = vector.shape_cast %86 : vector<1x8x32xf32> to vector<8x32xf32>
    %88 = vector.shape_cast %84 : vector<8x32xf32> to vector<1x8x32xf32>
    tpu.vector_store %arg8[%85, %c0_31, %c0_32], %88 {strides = array<i32>} : memref<8x8x32xf32, #tpu.memory_space<vmem>>, vector<1x8x32xf32>,
    %c2_i32 = arith.constant 2 : i32
    %89 = arith.index_cast %c2_i32 : i32 to index
    %c0_33 = arith.constant 0 : index
    %c0_34 = arith.constant 0 : index
    %90 = vector.load %arg11[%89, %c0_33, %c0_34] : memref<8x8x128xbf16, #tpu.memory_space<vmem>>, vector<1x8x128xbf16>
    %91 = vector.shape_cast %90 : vector<1x8x128xbf16> to vector<8x128xbf16>
    %92 = arith.extf %91 : vector<8x128xbf16> to vector<8x128xf32>
    %93 = arith.truncf %84 : vector<8x32xf32> to vector<8x32xbf16>
    %cst_35 = arith.constant dense<0.000000e+00> : vector<8x128xf32>
    %94 = tpu.matmul %93, %14, %cst_35 {dimension_numbers = #tpu.dot_dimension_numbers<[1], [0], [0], [1], [0, 0, 1, 1], [], []>} : vector<8x32xbf16>, vector<32x128xbf16>, vector<8x128xf32> -> vector<8x128xf32>
    %95 = arith.addf %92, %94 : vector<8x128xf32>
    %96 = vector.extract_strided_slice %95 {offsets = [0, 0], sizes = [8, 32], strides = [1, 1]} : vector<8x128xf32> to vector<8x32xf32>
    %97 = arith.negf %96 : vector<8x32xf32>
    %98 = math.exp %97 : vector<8x32xf32>
    %cst_36 = arith.constant 1.000000e+00 : f32
    %99 = vector.broadcast %cst_36 : f32 to vector<8x32xf32>
    %100 = arith.addf %99, %98 : vector<8x32xf32>
    %101 = arith.divf %99, %100 : vector<8x32xf32>
    %102 = vector.extract_strided_slice %95 {offsets = [0, 32], sizes = [8, 32], strides = [1, 1]} : vector<8x128xf32> to vector<8x32xf32>
    %103 = arith.negf %102 : vector<8x32xf32>
    %104 = math.exp %103 : vector<8x32xf32>
    %cst_37 = arith.constant 1.000000e+00 : f32
    %105 = vector.broadcast %cst_37 : f32 to vector<8x32xf32>
    %106 = arith.addf %105, %104 : vector<8x32xf32>
    %107 = arith.divf %105, %106 : vector<8x32xf32>
    %108 = vector.extract_strided_slice %95 {offsets = [0, 64], sizes = [8, 32], strides = [1, 1]} : vector<8x128xf32> to vector<8x32xf32>
    %109 = math.tanh %108 : vector<8x32xf32>
    %110 = vector.extract_strided_slice %95 {offsets = [0, 96], sizes = [8, 32], strides = [1, 1]} : vector<8x128xf32> to vector<8x32xf32>
    %111 = arith.negf %110 : vector<8x32xf32>
    %112 = math.exp %111 : vector<8x32xf32>
    %cst_38 = arith.constant 1.000000e+00 : f32
    %113 = vector.broadcast %cst_38 : f32 to vector<8x32xf32>
    %114 = arith.addf %113, %112 : vector<8x32xf32>
    %115 = arith.divf %113, %114 : vector<8x32xf32>
    %116 = arith.mulf %107, %82 : vector<8x32xf32>
    %117 = arith.mulf %101, %109 : vector<8x32xf32>
    %118 = arith.addf %116, %117 : vector<8x32xf32>
    %119 = math.tanh %118 : vector<8x32xf32>
    %120 = arith.mulf %115, %119 : vector<8x32xf32>
    %121 = arith.index_cast %c2_i32 : i32 to index
    %c0_39 = arith.constant 0 : index
    %c0_40 = arith.constant 0 : index
    %122 = vector.load %arg8[%121, %c0_39, %c0_40] : memref<8x8x32xf32, #tpu.memory_space<vmem>>, vector<1x8x32xf32>
    %123 = vector.shape_cast %122 : vector<1x8x32xf32> to vector<8x32xf32>
    %124 = vector.shape_cast %120 : vector<8x32xf32> to vector<1x8x32xf32>
    tpu.vector_store %arg8[%121, %c0_39, %c0_40], %124 {strides = array<i32>} : memref<8x8x32xf32, #tpu.memory_space<vmem>>, vector<1x8x32xf32>,
    %c3_i32 = arith.constant 3 : i32
    %125 = arith.index_cast %c3_i32 : i32 to index
    %c0_41 = arith.constant 0 : index
    %c0_42 = arith.constant 0 : index
    %126 = vector.load %arg11[%125, %c0_41, %c0_42] : memref<8x8x128xbf16, #tpu.memory_space<vmem>>, vector<1x8x128xbf16>
    %127 = vector.shape_cast %126 : vector<1x8x128xbf16> to vector<8x128xbf16>
    %128 = arith.extf %127 : vector<8x128xbf16> to vector<8x128xf32>
    %129 = arith.truncf %120 : vector<8x32xf32> to vector<8x32xbf16>
    %cst_43 = arith.constant dense<0.000000e+00> : vector<8x128xf32>
    %130 = tpu.matmul %129, %14, %cst_43 {dimension_numbers = #tpu.dot_dimension_numbers<[1], [0], [0], [1], [0, 0, 1, 1], [], []>} : vector<8x32xbf16>, vector<32x128xbf16>, vector<8x128xf32> -> vector<8x128xf32>
    %131 = arith.addf %128, %130 : vector<8x128xf32>
    %132 = vector.extract_strided_slice %131 {offsets = [0, 0], sizes = [8, 32], strides = [1, 1]} : vector<8x128xf32> to vector<8x32xf32>
    %133 = arith.negf %132 : vector<8x32xf32>
    %134 = math.exp %133 : vector<8x32xf32>
    %cst_44 = arith.constant 1.000000e+00 : f32
    %135 = vector.broadcast %cst_44 : f32 to vector<8x32xf32>
    %136 = arith.addf %135, %134 : vector<8x32xf32>
    %137 = arith.divf %135, %136 : vector<8x32xf32>
    %138 = vector.extract_strided_slice %131 {offsets = [0, 32], sizes = [8, 32], strides = [1, 1]} : vector<8x128xf32> to vector<8x32xf32>
    %139 = arith.negf %138 : vector<8x32xf32>
    %140 = math.exp %139 : vector<8x32xf32>
    %cst_45 = arith.constant 1.000000e+00 : f32
    %141 = vector.broadcast %cst_45 : f32 to vector<8x32xf32>
    %142 = arith.addf %141, %140 : vector<8x32xf32>
    %143 = arith.divf %141, %142 : vector<8x32xf32>
    %144 = vector.extract_strided_slice %131 {offsets = [0, 64], sizes = [8, 32], strides = [1, 1]} : vector<8x128xf32> to vector<8x32xf32>
    %145 = math.tanh %144 : vector<8x32xf32>
    %146 = vector.extract_strided_slice %131 {offsets = [0, 96], sizes = [8, 32], strides = [1, 1]} : vector<8x128xf32> to vector<8x32xf32>
    %147 = arith.negf %146 : vector<8x32xf32>
    %148 = math.exp %147 : vector<8x32xf32>
    %cst_46 = arith.constant 1.000000e+00 : f32
    %149 = vector.broadcast %cst_46 : f32 to vector<8x32xf32>
    %150 = arith.addf %149, %148 : vector<8x32xf32>
    %151 = arith.divf %149, %150 : vector<8x32xf32>
    %152 = arith.mulf %143, %118 : vector<8x32xf32>
    %153 = arith.mulf %137, %145 : vector<8x32xf32>
    %154 = arith.addf %152, %153 : vector<8x32xf32>
    %155 = math.tanh %154 : vector<8x32xf32>
    %156 = arith.mulf %151, %155 : vector<8x32xf32>
    %157 = arith.index_cast %c3_i32 : i32 to index
    %c0_47 = arith.constant 0 : index
    %c0_48 = arith.constant 0 : index
    %158 = vector.load %arg8[%157, %c0_47, %c0_48] : memref<8x8x32xf32, #tpu.memory_space<vmem>>, vector<1x8x32xf32>
    %159 = vector.shape_cast %158 : vector<1x8x32xf32> to vector<8x32xf32>
    %160 = vector.shape_cast %156 : vector<8x32xf32> to vector<1x8x32xf32>
    tpu.vector_store %arg8[%157, %c0_47, %c0_48], %160 {strides = array<i32>} : memref<8x8x32xf32, #tpu.memory_space<vmem>>, vector<1x8x32xf32>,
    %c4_i32 = arith.constant 4 : i32
    %161 = arith.index_cast %c4_i32 : i32 to index
    %c0_49 = arith.constant 0 : index
    %c0_50 = arith.constant 0 : index
    %162 = vector.load %arg11[%161, %c0_49, %c0_50] : memref<8x8x128xbf16, #tpu.memory_space<vmem>>, vector<1x8x128xbf16>
    %163 = vector.shape_cast %162 : vector<1x8x128xbf16> to vector<8x128xbf16>
    %164 = arith.extf %163 : vector<8x128xbf16> to vector<8x128xf32>
    %165 = arith.truncf %156 : vector<8x32xf32> to vector<8x32xbf16>
    %cst_51 = arith.constant dense<0.000000e+00> : vector<8x128xf32>
    %166 = tpu.matmul %165, %14, %cst_51 {dimension_numbers = #tpu.dot_dimension_numbers<[1], [0], [0], [1], [0, 0, 1, 1], [], []>} : vector<8x32xbf16>, vector<32x128xbf16>, vector<8x128xf32> -> vector<8x128xf32>
    %167 = arith.addf %164, %166 : vector<8x128xf32>
    %168 = vector.extract_strided_slice %167 {offsets = [0, 0], sizes = [8, 32], strides = [1, 1]} : vector<8x128xf32> to vector<8x32xf32>
    %169 = arith.negf %168 : vector<8x32xf32>
    %170 = math.exp %169 : vector<8x32xf32>
    %cst_52 = arith.constant 1.000000e+00 : f32
    %171 = vector.broadcast %cst_52 : f32 to vector<8x32xf32>
    %172 = arith.addf %171, %170 : vector<8x32xf32>
    %173 = arith.divf %171, %172 : vector<8x32xf32>
    %174 = vector.extract_strided_slice %167 {offsets = [0, 32], sizes = [8, 32], strides = [1, 1]} : vector<8x128xf32> to vector<8x32xf32>
    %175 = arith.negf %174 : vector<8x32xf32>
    %176 = math.exp %175 : vector<8x32xf32>
    %cst_53 = arith.constant 1.000000e+00 : f32
    %177 = vector.broadcast %cst_53 : f32 to vector<8x32xf32>
    %178 = arith.addf %177, %176 : vector<8x32xf32>
    %179 = arith.divf %177, %178 : vector<8x32xf32>
    %180 = vector.extract_strided_slice %167 {offsets = [0, 64], sizes = [8, 32], strides = [1, 1]} : vector<8x128xf32> to vector<8x32xf32>
    %181 = math.tanh %180 : vector<8x32xf32>
    %182 = vector.extract_strided_slice %167 {offsets = [0, 96], sizes = [8, 32], strides = [1, 1]} : vector<8x128xf32> to vector<8x32xf32>
    %183 = arith.negf %182 : vector<8x32xf32>
    %184 = math.exp %183 : vector<8x32xf32>
    %cst_54 = arith.constant 1.000000e+00 : f32
    %185 = vector.broadcast %cst_54 : f32 to vector<8x32xf32>
    %186 = arith.addf %185, %184 : vector<8x32xf32>
    %187 = arith.divf %185, %186 : vector<8x32xf32>
    %188 = arith.mulf %179, %154 : vector<8x32xf32>
    %189 = arith.mulf %173, %181 : vector<8x32xf32>
    %190 = arith.addf %188, %189 : vector<8x32xf32>
    %191 = math.tanh %190 : vector<8x32xf32>
    %192 = arith.mulf %187, %191 : vector<8x32xf32>
    %193 = arith.index_cast %c4_i32 : i32 to index
    %c0_55 = arith.constant 0 : index
    %c0_56 = arith.constant 0 : index
    %194 = vector.load %arg8[%193, %c0_55, %c0_56] : memref<8x8x32xf32, #tpu.memory_space<vmem>>, vector<1x8x32xf32>
    %195 = vector.shape_cast %194 : vector<1x8x32xf32> to vector<8x32xf32>
    %196 = vector.shape_cast %192 : vector<8x32xf32> to vector<1x8x32xf32>
    tpu.vector_store %arg8[%193, %c0_55, %c0_56], %196 {strides = array<i32>} : memref<8x8x32xf32, #tpu.memory_space<vmem>>, vector<1x8x32xf32>,
    %c5_i32 = arith.constant 5 : i32
    %197 = arith.index_cast %c5_i32 : i32 to index
    %c0_57 = arith.constant 0 : index
    %c0_58 = arith.constant 0 : index
    %198 = vector.load %arg11[%197, %c0_57, %c0_58] : memref<8x8x128xbf16, #tpu.memory_space<vmem>>, vector<1x8x128xbf16>
    %199 = vector.shape_cast %198 : vector<1x8x128xbf16> to vector<8x128xbf16>
    %200 = arith.extf %199 : vector<8x128xbf16> to vector<8x128xf32>
    %201 = arith.truncf %192 : vector<8x32xf32> to vector<8x32xbf16>
    %cst_59 = arith.constant dense<0.000000e+00> : vector<8x128xf32>
    %202 = tpu.matmul %201, %14, %cst_59 {dimension_numbers = #tpu.dot_dimension_numbers<[1], [0], [0], [1], [0, 0, 1, 1], [], []>} : vector<8x32xbf16>, vector<32x128xbf16>, vector<8x128xf32> -> vector<8x128xf32>
    %203 = arith.addf %200, %202 : vector<8x128xf32>
    %204 = vector.extract_strided_slice %203 {offsets = [0, 0], sizes = [8, 32], strides = [1, 1]} : vector<8x128xf32> to vector<8x32xf32>
    %205 = arith.negf %204 : vector<8x32xf32>
    %206 = math.exp %205 : vector<8x32xf32>
    %cst_60 = arith.constant 1.000000e+00 : f32
    %207 = vector.broadcast %cst_60 : f32 to vector<8x32xf32>
    %208 = arith.addf %207, %206 : vector<8x32xf32>
    %209 = arith.divf %207, %208 : vector<8x32xf32>
    %210 = vector.extract_strided_slice %203 {offsets = [0, 32], sizes = [8, 32], strides = [1, 1]} : vector<8x128xf32> to vector<8x32xf32>
    %211 = arith.negf %210 : vector<8x32xf32>
    %212 = math.exp %211 : vector<8x32xf32>
    %cst_61 = arith.constant 1.000000e+00 : f32
    %213 = vector.broadcast %cst_61 : f32 to vector<8x32xf32>
    %214 = arith.addf %213, %212 : vector<8x32xf32>
    %215 = arith.divf %213, %214 : vector<8x32xf32>
    %216 = vector.extract_strided_slice %203 {offsets = [0, 64], sizes = [8, 32], strides = [1, 1]} : vector<8x128xf32> to vector<8x32xf32>
    %217 = math.tanh %216 : vector<8x32xf32>
    %218 = vector.extract_strided_slice %203 {offsets = [0, 96], sizes = [8, 32], strides = [1, 1]} : vector<8x128xf32> to vector<8x32xf32>
    %219 = arith.negf %218 : vector<8x32xf32>
    %220 = math.exp %219 : vector<8x32xf32>
    %cst_62 = arith.constant 1.000000e+00 : f32
    %221 = vector.broadcast %cst_62 : f32 to vector<8x32xf32>
    %222 = arith.addf %221, %220 : vector<8x32xf32>
    %223 = arith.divf %221, %222 : vector<8x32xf32>
    %224 = arith.mulf %215, %190 : vector<8x32xf32>
    %225 = arith.mulf %209, %217 : vector<8x32xf32>
    %226 = arith.addf %224, %225 : vector<8x32xf32>
    %227 = math.tanh %226 : vector<8x32xf32>
    %228 = arith.mulf %223, %227 : vector<8x32xf32>
    %229 = arith.index_cast %c5_i32 : i32 to index
    %c0_63 = arith.constant 0 : index
    %c0_64 = arith.constant 0 : index
    %230 = vector.load %arg8[%229, %c0_63, %c0_64] : memref<8x8x32xf32, #tpu.memory_space<vmem>>, vector<1x8x32xf32>
    %231 = vector.shape_cast %230 : vector<1x8x32xf32> to vector<8x32xf32>
    %232 = vector.shape_cast %228 : vector<8x32xf32> to vector<1x8x32xf32>
    tpu.vector_store %arg8[%229, %c0_63, %c0_64], %232 {strides = array<i32>} : memref<8x8x32xf32, #tpu.memory_space<vmem>>, vector<1x8x32xf32>,
    %c6_i32 = arith.constant 6 : i32
    %233 = arith.index_cast %c6_i32 : i32 to index
    %c0_65 = arith.constant 0 : index
    %c0_66 = arith.constant 0 : index
    %234 = vector.load %arg11[%233, %c0_65, %c0_66] : memref<8x8x128xbf16, #tpu.memory_space<vmem>>, vector<1x8x128xbf16>
    %235 = vector.shape_cast %234 : vector<1x8x128xbf16> to vector<8x128xbf16>
    %236 = arith.extf %235 : vector<8x128xbf16> to vector<8x128xf32>
    %237 = arith.truncf %228 : vector<8x32xf32> to vector<8x32xbf16>
    %cst_67 = arith.constant dense<0.000000e+00> : vector<8x128xf32>
    %238 = tpu.matmul %237, %14, %cst_67 {dimension_numbers = #tpu.dot_dimension_numbers<[1], [0], [0], [1], [0, 0, 1, 1], [], []>} : vector<8x32xbf16>, vector<32x128xbf16>, vector<8x128xf32> -> vector<8x128xf32>
    %239 = arith.addf %236, %238 : vector<8x128xf32>
    %240 = vector.extract_strided_slice %239 {offsets = [0, 0], sizes = [8, 32], strides = [1, 1]} : vector<8x128xf32> to vector<8x32xf32>
    %241 = arith.negf %240 : vector<8x32xf32>
    %242 = math.exp %241 : vector<8x32xf32>
    %cst_68 = arith.constant 1.000000e+00 : f32
    %243 = vector.broadcast %cst_68 : f32 to vector<8x32xf32>
    %244 = arith.addf %243, %242 : vector<8x32xf32>
    %245 = arith.divf %243, %244 : vector<8x32xf32>
    %246 = vector.extract_strided_slice %239 {offsets = [0, 32], sizes = [8, 32], strides = [1, 1]} : vector<8x128xf32> to vector<8x32xf32>
    %247 = arith.negf %246 : vector<8x32xf32>
    %248 = math.exp %247 : vector<8x32xf32>
    %cst_69 = arith.constant 1.000000e+00 : f32
    %249 = vector.broadcast %cst_69 : f32 to vector<8x32xf32>
    %250 = arith.addf %249, %248 : vector<8x32xf32>
    %251 = arith.divf %249, %250 : vector<8x32xf32>
    %252 = vector.extract_strided_slice %239 {offsets = [0, 64], sizes = [8, 32], strides = [1, 1]} : vector<8x128xf32> to vector<8x32xf32>
    %253 = math.tanh %252 : vector<8x32xf32>
    %254 = vector.extract_strided_slice %239 {offsets = [0, 96], sizes = [8, 32], strides = [1, 1]} : vector<8x128xf32> to vector<8x32xf32>
    %255 = arith.negf %254 : vector<8x32xf32>
    %256 = math.exp %255 : vector<8x32xf32>
    %cst_70 = arith.constant 1.000000e+00 : f32
    %257 = vector.broadcast %cst_70 : f32 to vector<8x32xf32>
    %258 = arith.addf %257, %256 : vector<8x32xf32>
    %259 = arith.divf %257, %258 : vector<8x32xf32>
    %260 = arith.mulf %251, %226 : vector<8x32xf32>
    %261 = arith.mulf %245, %253 : vector<8x32xf32>
    %262 = arith.addf %260, %261 : vector<8x32xf32>
    %263 = math.tanh %262 : vector<8x32xf32>
    %264 = arith.mulf %259, %263 : vector<8x32xf32>
    %265 = arith.index_cast %c6_i32 : i32 to index
    %c0_71 = arith.constant 0 : index
    %c0_72 = arith.constant 0 : index
    %266 = vector.load %arg8[%265, %c0_71, %c0_72] : memref<8x8x32xf32, #tpu.memory_space<vmem>>, vector<1x8x32xf32>
    %267 = vector.shape_cast %266 : vector<1x8x32xf32> to vector<8x32xf32>
    %268 = vector.shape_cast %264 : vector<8x32xf32> to vector<1x8x32xf32>
    tpu.vector_store %arg8[%265, %c0_71, %c0_72], %268 {strides = array<i32>} : memref<8x8x32xf32, #tpu.memory_space<vmem>>, vector<1x8x32xf32>,
    %c7_i32 = arith.constant 7 : i32
    %269 = arith.index_cast %c7_i32 : i32 to index
    %c0_73 = arith.constant 0 : index
    %c0_74 = arith.constant 0 : index
    %270 = vector.load %arg11[%269, %c0_73, %c0_74] : memref<8x8x128xbf16, #tpu.memory_space<vmem>>, vector<1x8x128xbf16>
    %271 = vector.shape_cast %270 : vector<1x8x128xbf16> to vector<8x128xbf16>
    %272 = arith.extf %271 : vector<8x128xbf16> to vector<8x128xf32>
    %273 = arith.truncf %264 : vector<8x32xf32> to vector<8x32xbf16>
    %cst_75 = arith.constant dense<0.000000e+00> : vector<8x128xf32>
    %274 = tpu.matmul %273, %14, %cst_75 {dimension_numbers = #tpu.dot_dimension_numbers<[1], [0], [0], [1], [0, 0, 1, 1], [], []>} : vector<8x32xbf16>, vector<32x128xbf16>, vector<8x128xf32> -> vector<8x128xf32>
    %275 = arith.addf %272, %274 : vector<8x128xf32>
    %276 = vector.extract_strided_slice %275 {offsets = [0, 0], sizes = [8, 32], strides = [1, 1]} : vector<8x128xf32> to vector<8x32xf32>
    %277 = arith.negf %276 : vector<8x32xf32>
    %278 = math.exp %277 : vector<8x32xf32>
    %cst_76 = arith.constant 1.000000e+00 : f32
    %279 = vector.broadcast %cst_76 : f32 to vector<8x32xf32>
    %280 = arith.addf %279, %278 : vector<8x32xf32>
    %281 = arith.divf %279, %280 : vector<8x32xf32>
    %282 = vector.extract_strided_slice %275 {offsets = [0, 32], sizes = [8, 32], strides = [1, 1]} : vector<8x128xf32> to vector<8x32xf32>
    %283 = arith.negf %282 : vector<8x32xf32>
    %284 = math.exp %283 : vector<8x32xf32>
    %cst_77 = arith.constant 1.000000e+00 : f32
    %285 = vector.broadcast %cst_77 : f32 to vector<8x32xf32>
    %286 = arith.addf %285, %284 : vector<8x32xf32>
    %287 = arith.divf %285, %286 : vector<8x32xf32>
    %288 = vector.extract_strided_slice %275 {offsets = [0, 64], sizes = [8, 32], strides = [1, 1]} : vector<8x128xf32> to vector<8x32xf32>
    %289 = math.tanh %288 : vector<8x32xf32>
    %290 = vector.extract_strided_slice %275 {offsets = [0, 96], sizes = [8, 32], strides = [1, 1]} : vector<8x128xf32> to vector<8x32xf32>
    %291 = arith.negf %290 : vector<8x32xf32>
    %292 = math.exp %291 : vector<8x32xf32>
    %cst_78 = arith.constant 1.000000e+00 : f32
    %293 = vector.broadcast %cst_78 : f32 to vector<8x32xf32>
    %294 = arith.addf %293, %292 : vector<8x32xf32>
    %295 = arith.divf %293, %294 : vector<8x32xf32>
    %296 = arith.mulf %287, %262 : vector<8x32xf32>
    %297 = arith.mulf %281, %289 : vector<8x32xf32>
    %298 = arith.addf %296, %297 : vector<8x32xf32>
    %299 = math.tanh %298 : vector<8x32xf32>
    %300 = arith.mulf %295, %299 : vector<8x32xf32>
    %301 = arith.index_cast %c7_i32 : i32 to index
    %c0_79 = arith.constant 0 : index
    %c0_80 = arith.constant 0 : index
    %302 = vector.load %arg8[%301, %c0_79, %c0_80] : memref<8x8x32xf32, #tpu.memory_space<vmem>>, vector<1x8x32xf32>
    %303 = vector.shape_cast %302 : vector<1x8x32xf32> to vector<8x32xf32>
    %304 = vector.shape_cast %300 : vector<8x32xf32> to vector<1x8x32xf32>
    tpu.vector_store %arg8[%301, %c0_79, %c0_80], %304 {strides = array<i32>} : memref<8x8x32xf32, #tpu.memory_space<vmem>>, vector<1x8x32xf32>,
    %c8_i32 = arith.constant 8 : i32
    %c0_81 = arith.constant 0 : index
    %c0_82 = arith.constant 0 : index
    %305 = vector.load %arg9[%c0_81, %c0_82] : memref<8x32xf32, #tpu.memory_space<vmem>>, vector<8x32xf32>
    tpu.vector_store %arg9[%c0_81, %c0_82], %300 {strides = array<i32>} : memref<8x32xf32, #tpu.memory_space<vmem>>, vector<8x32xf32>,
    %c0_83 = arith.constant 0 : index
    %c0_84 = arith.constant 0 : index
    %306 = vector.load %arg10[%c0_83, %c0_84] : memref<8x32xf32, #tpu.memory_space<vmem>>, vector<8x32xf32>
    tpu.vector_store %arg10[%c0_83, %c0_84], %298 {strides = array<i32>} : memref<8x32xf32, #tpu.memory_space<vmem>>, vector<8x32xf32>,
    return
  }
  func.func @transform_0(%arg0: i32, %arg1: i32) -> (i32, i32, i32) {
    %c0_i32 = arith.constant 0 : i32
    %c0_i32_0 = arith.constant 0 : i32
    return %arg1, %arg0, %c0_i32 : i32, i32, i32
  }
  func.func @transform_1(%arg0: i32, %arg1: i32) -> (i32, i32) {
    %c0_i32 = arith.constant 0 : i32
    %c0_i32_0 = arith.constant 0 : i32
    return %arg0, %c0_i32 : i32, i32
  }
  func.func @transform_2(%arg0: i32, %arg1: i32) -> (i32, i32) {
    %c0_i32 = arith.constant 0 : i32
    %c0_i32_0 = arith.constant 0 : i32
    return %arg0, %c0_i32 : i32, i32
  }
  func.func @transform_3(%arg0: i32, %arg1: i32) -> (i32, i32) {
    %c0_i32 = arith.constant 0 : i32
    %c0_i32_0 = arith.constant 0 : i32
    %c0_i32_1 = arith.constant 0 : i32
    return %c0_i32, %c0_i32_0 : i32, i32
  }
  func.func @transform_4(%arg0: i32, %arg1: i32) -> (i32, i32) {
    %c0_i32 = arith.constant 0 : i32
    %c0_i32_0 = arith.constant 0 : i32
    %c0_i32_1 = arith.constant 0 : i32
    return %c0_i32, %c0_i32_0 : i32, i32
  }
  func.func @transform_5(%arg0: i32, %arg1: i32) -> (i32, i32) {
    %c0_i32 = arith.constant 0 : i32
    %c0_i32_0 = arith.constant 0 : i32
    %c0_i32_1 = arith.constant 0 : i32
    return %c0_i32, %c0_i32_0 : i32, i32
  }
  func.func @transform_6(%arg0: i32, %arg1: i32) -> (i32, i32, i32) {
    %c0_i32 = arith.constant 0 : i32
    %c0_i32_0 = arith.constant 0 : i32
    return %arg1, %arg0, %c0_i32 : i32, i32, i32
  }
}

</mosaic_0001>

<bundles_post_ra>
// kernel: tpu_custom_call.1
= control target key start
LH: loop header
LB: loop body
LE: loop exit
PB: predicated region body
PF: predicated region fallthrough
CT: control target
= control target key end

     0   :  { %11 = vsyncpa [#allocation6], 0  ;;  %s1537_s0 = inlined_call_operand.hbm [shape: f32[8,8,16], index: 0, kind: input, shape index: {}]   ;;  %s1538_s1 = inlined_call_operand.hbm [shape: f32[8,32], index: 1, kind: input, shape index: {}]   ;;  %s1539_s2 = inlined_call_operand.hbm [shape: f32[8,32], index: 2, kind: input, shape index: {}]   ;;  %s1540_s3 = inlined_call_operand.vmem [shape: bf16[16,128], index: 3, kind: input, shape index: {}]   ;;  %s1541_s4 = inlined_call_operand.hbm [shape: bf16[32,128], index: 4, kind: input, shape index: {}]   ;;  %s1542_s5 = inlined_call_operand.vmem [shape: f32[1,128], index: 5, kind: input, shape index: {}]   ;;  %s1543_s6 = inlined_call_operand.hbm [shape: f32[8,8,32], index: 6, kind: output, shape index: {}]  }
   0x1   :  { %12 = vsyncpa [#allocation9], 0 }
   0x2   :  { %13 = vsyncpa [#allocation12], 0 }
   0x3   :  { %14 = vsyncpa [#allocation7], 0  ;;  %s1245_s21 = smov [#allocation8]   ;;  %s1246_s23 = smov [#allocation5]  }
   0x4   :  { %s33_s22 = sshll.u32 %s1245_s21, 4  ;;  %s20_s24 = sshll.u32 %s1246_s23, 4  ;;  %s34_s22 = int_to_ptr.vmem [resolvable:$true] %s33_s22  ;;  %s1293_s24 = int_to_ptr.vmem [resolvable:$true] %s20_s24 }
   0x5   :  { %s1127_s27 = scalar_lea.hbm %s1538_s1, 128 }
   0x6   :  { %p1128_p0 = scmp.ne.s32.totalorder %s1538_s1, %s1127_s27  ;;  %p1131_p1 = scmp.lt.u32.totalorder %s1127_s27, %s1538_s1 }
   0x8   :  { %p1133_p2 = pnand %p1131_p1, %p1128_p0 }
   0xa   :  { %1136 = shalt.err (!%p1133_p2)
}
   0xb   :  { %s1137_s8 = scalar_lea.vmem %s34_s22, 128  ;;  %p1142_p4 = scmp.lt.s32.totalorder %s34_s22, %s34_s22 }
   0xc   :  { %p1138_p3 = scmp.ne.s32.totalorder %s34_s22, %s1137_s8  ;;  %p1143_p5 = scmp.lt.s32.totalorder %s1137_s8, %s1137_s8 }
   0xe   :  { %p1144_p6 = por %p1143_p5, %p1142_p4 }
  0x10   :  { %p1145_p7 = pnand %p1144_p6, %p1138_p3 }
  0x12   :  { %1148 = shalt.err (!%p1145_p7)
}
  0x13   :  { %36 = dma.hbm_to_vmem [thread:$0]  %s1538_s1, 128, %s34_s22, [#allocation9]  }
  0x14   :  { %s1149_s13 = scalar_lea.hbm %s1537_s0, 1024 }
  0x15   :  { %p1150_p8 = scmp.ne.s32.totalorder %s1537_s0, %s1149_s13  ;;  %p1153_p9 = scmp.lt.u32.totalorder %s1149_s13, %s1537_s0 }
  0x17   :  { %p1155_p10 = pnand %p1153_p9, %p1150_p8 }
  0x19   :  { %1158 = shalt.err (!%p1155_p10)
}
  0x1a   :  { %s1159_s18 = scalar_lea.vmem %s1293_s24, 1024  ;;  %p1164_p12 = scmp.lt.s32.totalorder %s1293_s24, %s1293_s24 }
  0x1b   :  { %p1160_p11 = scmp.ne.s32.totalorder %s1293_s24, %s1159_s18  ;;  %p1165_p13 = scmp.lt.s32.totalorder %s1159_s18, %s1159_s18 }
  0x1d   :  { %p1166_p0 = por %p1165_p13, %p1164_p12 }
  0x1f   :  { %p1167_p1 = pnand %p1166_p0, %p1160_p11 }
  0x21   :  { %1170 = shalt.err (!%p1167_p1)
}
  0x22   :  { %s1247_s1 = smov 128   ;;  %s1248_s19 = smov 8  }
  0x23   :  { %26 = dma.hbm_to_vmem [thread:$0]  %s1537_s0, 1024, %s1293_s24, [#allocation6], %s1247_s1, %s1247_s1, %s1248_s19  }
  0x24   :  { %s1249_s22 = smov [#allocation10]   ;;  %s1250_s25 = smov [#allocation11]  }
  0x25   :  { %s43_s23 = sshll.u32 %s1249_s22, 4  ;;  %s54_s26 = sshll.u32 %s1250_s25, 4  ;;  %s44_s23 = int_to_ptr.vmem [resolvable:$true] %s43_s23  ;;  %s1327_s26 = int_to_ptr.vmem [resolvable:$true] %s54_s26 }
  0x26   :  { %s1171_s29 = scalar_lea.hbm %s1539_s2, 128 }
  0x27   :  { %p1172_p2 = scmp.ne.s32.totalorder %s1539_s2, %s1171_s29  ;;  %p1175_p3 = scmp.lt.u32.totalorder %s1171_s29, %s1539_s2 }
  0x29   :  { %p1177_p4 = pnand %p1175_p3, %p1172_p2 }
  0x2b   :  { %1180 = shalt.err (!%p1177_p4)
}
  0x2c   :  { %s1181_s0 = scalar_lea.vmem %s44_s23, 128  ;;  %p1186_p6 = scmp.lt.s32.totalorder %s44_s23, %s44_s23 }
  0x2d   :  { %p1182_p5 = scmp.ne.s32.totalorder %s44_s23, %s1181_s0  ;;  %p1187_p7 = scmp.lt.s32.totalorder %s1181_s0, %s1181_s0 }
  0x2f   :  { %p1188_p8 = por %p1187_p7, %p1186_p6 }
  0x31   :  { %p1189_p9 = pnand %p1188_p8, %p1182_p5 }
  0x33   :  { %1192 = shalt.err (!%p1189_p9)
}
  0x34   :  { %46 = dma.hbm_to_vmem [thread:$0]  %s1539_s2, 128, %s44_s23, [#allocation9]  }
  0x35   :  { %s1193_s13 = scalar_lea.hbm %s1541_s4, 256 }
  0x36   :  { %p1194_p10 = scmp.ne.s32.totalorder %s1541_s4, %s1193_s13  ;;  %p1197_p11 = scmp.lt.u32.totalorder %s1193_s13, %s1541_s4 }
  0x38   :  { %p1199_p12 = pnand %p1197_p11, %p1194_p10 }
  0x3a   :  { %1202 = shalt.err (!%p1199_p12)
}
  0x3b   :  { %s1203_s18 = scalar_lea.vmem %s1327_s26, 256  ;;  %p1208_p0 = scmp.lt.s32.totalorder %s1327_s26, %s1327_s26 }
  0x3c   :  { %p1204_p13 = scmp.ne.s32.totalorder %s1327_s26, %s1203_s18  ;;  %p1209_p1 = scmp.lt.s32.totalorder %s1203_s18, %s1203_s18 }
  0x3e   :  { %p1210_p2 = por %p1209_p1, %p1208_p0 }
  0x40   :  { %p1211_p3 = pnand %p1210_p2, %p1204_p13 }
  0x42   :  { %1214 = shalt.err (!%p1211_p3)
}
  0x43   :  { %s1251_s2 = smov 64   ;;  %s1252_s20 = smov 4  }
  0x44   :  { %60 = dma.hbm_to_vmem [thread:$0]  %s1541_s4, 256, %s1327_s26, [#allocation12], %s1251_s2, %s1251_s2, %s1252_s20  }
  0x45   :  { %1237 = dma.done.wait [#allocation6], 1024  }
  0x46   :  { %1238 = vsyncadd [#allocation6], 4294966272 }
  0x47   :  { %1239 = dma.done.wait [#allocation9], 256  }
  0x48   :  { %1240 = vsyncadd [#allocation9], 4294967040 }
  0x49   :  { %1241 = dma.done.wait [#allocation12], 256  }
  0x4a   :  { %1242 = vsyncadd [#allocation12], 4294967040  ;;  %v1253_v0 = vmov 0.0   ;;  %vm1254_vm0 = vmmov 0   ;;  %v1060_v1 = vld [vmem:[%s1540_s3] sm:$0xff]   ;;  %v85_v2 = vld [vmem:[#allocation5] sm:$0xff] }
  0x4b   :  { %983 = vmatprep.subr.bf16.mxu1 %v1253_v0  ;;  %987 = vmatprep.mubr.msk.bf16.mxu1 %vm1254_vm0, %v1253_v0  ;;  %v86_v3 = vld [vmem:[#allocation5 + $0x8] sm:$0xff]  ;;  %vm112_vm1 = vcmask 130048   ;;  %v87_v4 = vld [vmem:[#allocation5 + $0x10] sm:$0xff]  ;;  %v88_v6 = vld [vmem:[#allocation5 + $0x18] sm:$0xff]  ;;  %vm81_vm2 = vcmask 261120   ;;  %s1256_s26 = smov 96  }
  0x4c   :  { %973 = vmatprep.subr.bf16.mxu0 %v1060_v1  ;;  %v93_v5 = vpack.c.bf16 %v86_v3, %v85_v2  ;;  %v94_v7 = vpack.c.bf16 %v88_v6, %v87_v4  ;;  %v1366_v8 = vld [vmem:[#allocation11] sm:$0xff]   ;;  %v80_v9 = vld [vmem:[#allocation8] sm:$0xff]  ;;  %v1371_v10 = vld [vmem:[#allocation11 + $0x8] sm:$0xff]   ;;  %s1257_s27 = smov [#allocation13]  }
  0x4d   :  { %974 = vmatpush3.bf16.msra.mxu0 %v1060_v1  ;;  %984 = vmatpush3.bf16.msra.mxu1 %v1366_v8  ;;  %82 = vst.msk [vmem:[#allocation2] sm:$0xff] %vm81_vm2, %v80_v9  ;;  %v83_v13 = vld [vmem:[#allocation10] sm:$0xff]  ;;  %v1393_v15 = vld [vmem:[%s1542_s5] ss:$0 sm:$0xff]  ;;  %s1255_s5 = smov 32   ;;  %v89_v2 = vld [vmem:[#allocation5 + $0x20] sm:$0xff] }
  0x4e   :  { %975 = vmatprep.mubr.msk.bf16.mxu0 %vm112_vm1, %v93_v5  ;;  %999 = vmatprep.subr.bf16.mxu0 %v1253_v0  ;;  %84 = vst.msk [vmem:[#allocation3] sm:$0xff] %vm81_vm2, %v83_v13  ;;  %v90_v3 = vld [vmem:[#allocation5 + $0x28] sm:$0xff]  ;;  %v91_v4 = vld [vmem:[#allocation5 + $0x30] sm:$0xff]  ;;  %v92_v6 = vld [vmem:[#allocation5 + $0x38] sm:$0xff]  ;;  %s883_s28 = sshll.u32 %s1257_s27, 4  ;;  %s884_s28 = int_to_ptr.vmem [resolvable:$true] %s883_s28 }
  0x4f   :  { %985 = vmatprep.subr.bf16.mxu1 %v1253_v0  ;;  %v95_v5 = vpack.c.bf16 %v90_v3, %v89_v2  ;;  %s1215_s29 = scalar_lea.vmem %s884_s28, 1024  ;;  %p1220_p5 = scmp.lt.s32.totalorder %s884_s28, %s884_s28 }
  0x50   :  { %976 = vmatmul.mubr.msk.bf16.vlgmr.msra.gmra.mrb[0].mxu0 %vm112_vm1, %v94_v7  ;;  %v96_v7 = vpack.c.bf16 %v92_v6, %v91_v4  ;;  %p1216_p4 = scmp.ne.s32.totalorder %s884_s28, %s1215_s29  ;;  %p1221_p6 = scmp.lt.s32.totalorder %s1215_s29, %s1215_s29 }
  0x51   :  { %1000 = vmatpush3.bf16.msra.mxu0 %v1366_v8  ;;  %986 = vmatpush3.bf16.msra.mxu1 %v1371_v10 }
  0x52   :  { %1001 = vmatprep.subr.bf16.mxu0 %v1253_v0  ;;  %991 = vmatprep.subr.bf16.mxu1 %v1253_v0  ;;  %p1222_p7 = por %p1221_p6, %p1220_p5 }
  0x53   :  { %979 = vmatprep.mubr.msk.bf16.mxu0 %vm112_vm1, %v95_v5 }
  0x54   :  { %v210_v11 = vld [vmem:[#allocation2] sm:$0xff]  ;;  %p1223_p8 = pnand %p1222_p7, %p1216_p4 }
  0x55   :  { %1002 = vmatpush3.bf16.msra.mxu0 %v1371_v10  ;;  %v214_v12 = vpack.c.bf16 %v210_v11, %v210_v11  ;;  %v211_v33 = vld [vmem:[#allocation3] sm:$0xff] }
  0x56   :  { %1015 = vmatprep.subr.bf16.mxu0 %v1253_v0 }
  0x57   :  { %988 = vmatmul.mubr.msk.bf16.vlgmr.msra.gmra.mrb[0].mxu1 %vm81_vm2, %v214_v12 }
  0x58   :  { %992 = vmatpush3.bf16.msra.mxu1 %v1366_v8  ;;  %995 = vmatprep.mubr.msk.bf16.mxu1 %vm1254_vm0, %v1253_v0 }
  0x59   :  { %993 = vmatprep.subr.bf16.mxu1 %v1253_v0  ;;  %980 = vmatmul.mubr.msk.bf16.gmra.mrb[4].mxu0 %vm112_vm1, %v96_v7 }
  0x5a   :  { %1003 = vmatprep.mubr.msk.bf16.mxu0 %vm1254_vm0, %v1253_v0 }
  0x5c   :  { %994 = vmatpush3.bf16.msra.mxu1 %v1371_v10 }
  0x5d   :  { %1007 = vmatprep.subr.bf16.mxu1 %v1253_v0 }
 0x123   :  { %v977_v14 = vpop.f32.mrb[0].mxu0 }
 0x124   :  { %v159_v16 = vpop.f32.mrb[1].mxu0  ;;  %v168_v18 = vadd.f32 %v977_v14, %v1393_v15 }
 0x125   :  { %v978_v17 = vpop.f32.mrb[2].mxu0  ;;  %v160_v21 = vadd.f32 %v1393_v15, %v159_v16 }
 0x126   :  { %v171_v19 = vadd.f32 %v978_v17, %v1393_v15  ;;  %v162_v20 = vpop.f32.mrb[3].mxu0 }
 0x127   :  { %v163_v22 = vadd.f32 %v1393_v15, %v162_v20 }
 0x128   :  { %v929_v23 = vpack.c.bf16 %v171_v19, %v168_v18 }
 0x129   :  { %v924_v24 = vpack.c.bf16 %v163_v22, %v160_v21 }
 0x12a   :  { %941 = vst [vmem:[#allocation4 + $0x8] sm:$0xff] %v929_v23   ;;  %v265_v25 = vpop.f32.mrb[0].mxu1 }
 0x12b   :  { %925 = vst [vmem:[#allocation4] sm:$0xff] %v924_v24   ;;  %v989_v26 = vpop.f32.mrb[1].mxu1 }
 0x12c   :  { %v268_v27 = vpop.f32.mrb[2].mxu1  ;;  %v981_v14 = vpop.f32.mrb[4].mxu0 }
 0x12d   :  { %v990_v28 = vpop.f32.mrb[3].mxu1  ;;  %v184_v16 = vadd.f32 %v981_v14, %v1393_v15  ;;  %v175_v17 = vpop.f32.mrb[5].mxu0 }
 0x12e   :  { %v176_v18 = vadd.f32 %v1393_v15, %v175_v17  ;;  %v982_v19 = vpop.f32.mrb[6].mxu0 }
 0x12f   :  { %v187_v20 = vadd.f32 %v982_v19, %v1393_v15  ;;  %v178_v21 = vpop.f32.mrb[7].mxu0 }
 0x130   :  { %v179_v22 = vadd.f32 %v1393_v15, %v178_v21 }
 0x131   :  { %v939_v23 = vpack.c.bf16 %v187_v20, %v184_v16  ;;  %v387_v26 = vld [vmem:[#allocation4 + $0x8] sm:$0xff]  }
 0x132   :  { %v212_v29 = vld [vmem:[#allocation4] sm:$0xff]   ;;  %v934_v24 = vpack.c.bf16 %v179_v22, %v176_v18  ;;  %v388_v15 = vunpack.c.l.bf16 %v387_v26 }
 0x133   :  { %v213_v30 = vunpack.c.l.bf16 %v212_v29  ;;  %v307_v49 = vunpack.c.h.bf16 %v212_v29  ;;  %943 = vst [vmem:[#allocation4 + $0x18] sm:$0xff] %v939_v23  }
 0x134   :  { %942 = vst [vmem:[#allocation4 + $0x10] sm:$0xff] %v934_v24  }
 0x135   :  { %v271_v31 = vadd.f32 %v265_v25, %v213_v30 }
 0x137   :  { %1063 = vtanh.f32 %v271_v31  ;;  %v906_v34 = vmul.f32 -1.442695, %v271_v31 }
 0x139   :  { %1065 = vpow2.f32 %v906_v34 }
 0x13b   :  { %v549_v6 = vld [vmem:[#allocation4 + $0x10] sm:$0xff]  }
 0x13c   :  { %v550_v7 = vunpack.c.l.bf16 %v549_v6 }
 0x141   :  { %v1064_v32 = vpop.eup %1063 }
 0x142   :  { %285 = vrot.lane.b32.xlu0 %v1064_v32, %s1251_s2 }
 0x143   :  { %v1066_v35 = vpop.eup %1065 }
 0x144   :  { %v275_v36 = vadd.f32 1.0, %v1066_v35 }
 0x146   :  { %280 = vrot.lane.b32.xlu0 %v211_v33, %s1255_s5  ;;  %1067 = vrcp.f32 %v275_v36 }
 0x150   :  { %v1068_v37 = vpop.eup %1067 }
 0x1b4   :  { %v286_v38 = vpop.permute.xlu0 %285 }
 0x1b5   :  { %v288_v39 = vmul.f32 %v1068_v37, %v286_v38 }
 0x1b7   :  { %290 = vrot.lane.b32.xlu1 %v288_v39, %s1255_s5 }
 0x1b8   :  { %v281_v40 = vpop.permute.xlu0 %280 }
 0x1b9   :  { %v283_v41 = vmul.f32 %v1068_v37, %v281_v40 }
 0x229   :  { %v291_v42 = vpop.permute.xlu1 %290 }
 0x22a   :  { %v293_v43 = vadd.f32 %v291_v42, %v283_v41 }
 0x22c   :  { %1069 = vtanh.f32 %v293_v43 }
 0x236   :  { %v1070_v44 = vpop.eup %1069 }
 0x237   :  { %296 = vrot.lane.b32.xlu1 %v1070_v44, %s1251_s2 }
 0x2a9   :  { %v297_v45 = vpop.permute.xlu1 %296 }
 0x2aa   :  { %v1403_v46 = vmul.f32 %v1068_v37, %v297_v45 }
 0x2ac   :  { %v308_v47 = vpack.c.bf16 %v1403_v46, %v1403_v46 }
 0x2ae   :  { %310 = vrot.lane.b32.xlu0 %v308_v47, %s1255_s5 }
 0x320   :  { %v311_v48 = vpop.permute.xlu0 %310 }
 0x321   :  { %996 = vmatmul.mubr.msk.bf16.vlgmr.msra.gmra.mrb[4].mxu1 %vm81_vm2, %v311_v48  ;;  %v469_v48 = vunpack.c.h.bf16 %v387_v26 }
 0x322   :  { %1008 = vmatpush3.bf16.msra.mxu1 %v1366_v8  ;;  %1011 = vmatprep.mubr.msk.bf16.mxu1 %vm1254_vm0, %v1253_v0 }
 0x323   :  { %1009 = vmatprep.subr.bf16.mxu1 %v1253_v0 }
 0x326   :  { %1010 = vmatpush3.bf16.msra.mxu1 %v1371_v10 }
 0x327   :  { %1023 = vmatprep.subr.bf16.mxu1 %v1253_v0 }
 0x3f4   :  { %v349_v50 = vpop.f32.mrb[4].mxu1 }
 0x3f5   :  { %v355_v51 = vadd.f32 %v349_v50, %v307_v49  ;;  %v997_v52 = vpop.f32.mrb[5].mxu1 }
 0x3f6   :  { %v352_v53 = vpop.f32.mrb[6].mxu1 }
 0x3f7   :  { %1071 = vtanh.f32 %v355_v51  ;;  %v998_v54 = vpop.f32.mrb[7].mxu1  ;;  %v908_v56 = vmul.f32 -1.442695, %v355_v51 }
 0x3f9   :  { %1073 = vpow2.f32 %v908_v56 }
 0x401   :  { %v1072_v55 = vpop.eup %1071 }
 0x402   :  { %365 = vrot.lane.b32.xlu1 %v1072_v55, %s1251_s2 }
 0x403   :  { %v1074_v57 = vpop.eup %1073 }
 0x404   :  { %v359_v58 = vadd.f32 1.0, %v1074_v57 }
 0x406   :  { %1075 = vrcp.f32 %v359_v58 }
 0x410   :  { %v1076_v59 = vpop.eup %1075 }
 0x411   :  { %v363_v62 = vmul.f32 %v1076_v59, %v293_v43 }
 0x474   :  { %v366_v60 = vpop.permute.xlu1 %365 }
 0x475   :  { %v368_v61 = vmul.f32 %v1076_v59, %v366_v60 }
 0x477   :  { %370 = vrot.lane.b32.xlu0 %v368_v61, %s1255_s5 }
 0x4e9   :  { %v371_v63 = vpop.permute.xlu0 %370 }
 0x4ea   :  { %v373_v1 = vadd.f32 %v371_v63, %v363_v62 }
 0x4ec   :  { %1077 = vtanh.f32 %v373_v1 }
 0x4f6   :  { %v1078_v9 = vpop.eup %1077 }
 0x4f7   :  { %376 = vrot.lane.b32.xlu1 %v1078_v9, %s1251_s2 }
 0x569   :  { %v377_v11 = vpop.permute.xlu1 %376 }
 0x56a   :  { %v1422_v12 = vmul.f32 %v1076_v59, %v377_v11 }
 0x56c   :  { %v389_v13 = vpack.c.bf16 %v1422_v12, %v1422_v12 }
 0x56e   :  { %391 = vrot.lane.b32.xlu0 %v389_v13, %s1255_s5 }
 0x5e0   :  { %v392_v25 = vpop.permute.xlu0 %391 }
 0x5e1   :  { %1004 = vmatmul.mubr.msk.bf16.vlgmr.msra.gmra.mrb[8].mxu0 %vm81_vm2, %v392_v25 }
 0x5e2   :  { %1016 = vmatpush3.bf16.msra.mxu0 %v1366_v8  ;;  %1019 = vmatprep.mubr.msk.bf16.mxu0 %vm1254_vm0, %v1253_v0 }
 0x5e3   :  { %1017 = vmatprep.subr.bf16.mxu0 %v1253_v0 }
 0x5e6   :  { %1018 = vmatpush3.bf16.msra.mxu0 %v1371_v10 }
 0x5e7   :  { %1031 = vmatprep.subr.bf16.mxu0 %v1253_v0 }
 0x6b4   :  { %v430_v27 = vpop.f32.mrb[8].mxu0 }
 0x6b5   :  { %v436_v28 = vadd.f32 %v430_v27, %v388_v15  ;;  %v1005_v29 = vpop.f32.mrb[9].mxu0 }
 0x6b6   :  { %v433_v30 = vpop.f32.mrb[10].mxu0 }
 0x6b7   :  { %1079 = vtanh.f32 %v436_v28  ;;  %v1006_v31 = vpop.f32.mrb[11].mxu0  ;;  %v910_v33 = vmul.f32 -1.442695, %v436_v28 }
 0x6b8   :  { %v631_v31 = vunpack.c.h.bf16 %v549_v6 }
 0x6b9   :  { %1081 = vpow2.f32 %v910_v33 }
 0x6c1   :  { %v1080_v32 = vpop.eup %1079 }
 0x6c2   :  { %446 = vrot.lane.b32.xlu1 %v1080_v32, %s1251_s2 }
 0x6c3   :  { %v1082_v34 = vpop.eup %1081 }
 0x6c4   :  { %v440_v35 = vadd.f32 1.0, %v1082_v34 }
 0x6c6   :  { %1083 = vrcp.f32 %v440_v35 }
 0x6d0   :  { %v1084_v36 = vpop.eup %1083 }
 0x6d1   :  { %v444_v39 = vmul.f32 %v1084_v36, %v373_v1 }
 0x734   :  { %v447_v37 = vpop.permute.xlu1 %446 }
 0x735   :  { %v449_v38 = vmul.f32 %v1084_v36, %v447_v37 }
 0x737   :  { %451 = vrot.lane.b32.xlu0 %v449_v38, %s1255_s5 }
 0x7a9   :  { %v452_v40 = vpop.permute.xlu0 %451 }
 0x7aa   :  { %v454_v41 = vadd.f32 %v452_v40, %v444_v39 }
 0x7ac   :  { %1085 = vtanh.f32 %v454_v41 }
 0x7b6   :  { %v1086_v42 = vpop.eup %1085 }
 0x7b7   :  { %457 = vrot.lane.b32.xlu1 %v1086_v42, %s1251_s2 }
 0x829   :  { %v458_v43 = vpop.permute.xlu1 %457 }
 0x82a   :  { %v1441_v44 = vmul.f32 %v1084_v36, %v458_v43 }
 0x82c   :  { %v470_v45 = vpack.c.bf16 %v1441_v44, %v1441_v44 }
 0x82e   :  { %472 = vrot.lane.b32.xlu0 %v470_v45, %s1255_s5 }
 0x8a0   :  { %v473_v47 = vpop.permute.xlu0 %472 }
 0x8a1   :  { %1012 = vmatmul.mubr.msk.bf16.vlgmr.msra.gmra.mrb[8].mxu1 %vm81_vm2, %v473_v47 }
 0x8a2   :  { %1024 = vmatpush3.bf16.msra.mxu1 %v1366_v8  ;;  %1027 = vmatprep.mubr.msk.bf16.mxu1 %vm1254_vm0, %v1253_v0 }
 0x8a3   :  { %1025 = vmatprep.subr.bf16.mxu1 %v1253_v0 }
 0x8a6   :  { %1026 = vmatpush3.bf16.msra.mxu1 %v1371_v10 }
 0x8a7   :  { %1039 = vmatprep.subr.bf16.mxu1 %v1253_v0 }
 0x974   :  { %v511_v49 = vpop.f32.mrb[8].mxu1 }
 0x975   :  { %v517_v50 = vadd.f32 %v511_v49, %v469_v48  ;;  %v1013_v51 = vpop.f32.mrb[9].mxu1 }
 0x976   :  { %v514_v52 = vpop.f32.mrb[10].mxu1  ;;  %v711_v51 = vld [vmem:[#allocation4 + $0x18] sm:$0xff]  }
 0x977   :  { %1087 = vtanh.f32 %v517_v50  ;;  %v1014_v53 = vpop.f32.mrb[11].mxu1  ;;  %v912_v55 = vmul.f32 -1.442695, %v517_v50  ;;  %v712_v52 = vunpack.c.l.bf16 %v711_v51 }
 0x979   :  { %1089 = vpow2.f32 %v912_v55 }
 0x981   :  { %v1088_v54 = vpop.eup %1087 }
 0x982   :  { %527 = vrot.lane.b32.xlu1 %v1088_v54, %s1251_s2 }
 0x983   :  { %v1090_v56 = vpop.eup %1089 }
 0x984   :  { %v521_v57 = vadd.f32 1.0, %v1090_v56 }
 0x986   :  { %1091 = vrcp.f32 %v521_v57 }
 0x990   :  { %v1092_v58 = vpop.eup %1091 }
 0x991   :  { %v525_v61 = vmul.f32 %v1092_v58, %v454_v41 }
 0x9f4   :  { %v528_v59 = vpop.permute.xlu1 %527 }
 0x9f5   :  { %v530_v60 = vmul.f32 %v1092_v58, %v528_v59 }
 0x9f7   :  { %532 = vrot.lane.b32.xlu0 %v530_v60, %s1255_s5 }
 0xa69   :  { %v533_v62 = vpop.permute.xlu0 %532 }
 0xa6a   :  { %v535_v63 = vadd.f32 %v533_v62, %v525_v61 }
 0xa6c   :  { %1093 = vtanh.f32 %v535_v63 }
 0xa76   :  { %v1094_v1 = vpop.eup %1093 }
 0xa77   :  { %538 = vrot.lane.b32.xlu1 %v1094_v1, %s1251_s2 }
 0xae9   :  { %v539_v2 = vpop.permute.xlu1 %538 }
 0xaea   :  { %v1456_v3 = vmul.f32 %v1092_v58, %v539_v2 }
 0xaec   :  { %v551_v4 = vpack.c.bf16 %v1456_v3, %v1456_v3 }
 0xaee   :  { %553 = vrot.lane.b32.xlu0 %v551_v4, %s1255_s5 }
 0xb60   :  { %v554_v5 = vpop.permute.xlu0 %553 }
 0xb61   :  { %1020 = vmatmul.mubr.msk.bf16.vlgmr.msra.gmra.mrb[12].mxu0 %vm81_vm2, %v554_v5 }
 0xb62   :  { %1032 = vmatpush3.bf16.msra.mxu0 %v1366_v8  ;;  %1035 = vmatprep.mubr.msk.bf16.mxu0 %vm1254_vm0, %v1253_v0 }
 0xb63   :  { %1033 = vmatprep.subr.bf16.mxu0 %v1253_v0 }
 0xb66   :  { %1034 = vmatpush3.bf16.msra.mxu0 %v1371_v10 }
 0xc34   :  { %v592_v9 = vpop.f32.mrb[12].mxu0 }
 0xc35   :  { %v598_v11 = vadd.f32 %v592_v9, %v550_v7  ;;  %v1021_v13 = vpop.f32.mrb[13].mxu0 }
 0xc36   :  { %v595_v14 = vpop.f32.mrb[14].mxu0 }
 0xc37   :  { %1095 = vtanh.f32 %v598_v11  ;;  %v1022_v16 = vpop.f32.mrb[15].mxu0  ;;  %v914_v18 = vmul.f32 -1.442695, %v598_v11  ;;  %v793_v14 = vunpack.c.h.bf16 %v711_v51 }
 0xc39   :  { %1097 = vpow2.f32 %v914_v18 }
 0xc41   :  { %v1096_v17 = vpop.eup %1095 }
 0xc42   :  { %608 = vrot.lane.b32.xlu1 %v1096_v17, %s1251_s2 }
 0xc43   :  { %v1098_v19 = vpop.eup %1097 }
 0xc44   :  { %v602_v20 = vadd.f32 1.0, %v1098_v19 }
 0xc46   :  { %1099 = vrcp.f32 %v602_v20 }
 0xc50   :  { %v1100_v21 = vpop.eup %1099 }
 0xc51   :  { %v606_v24 = vmul.f32 %v1100_v21, %v535_v63 }
 0xcb4   :  { %v609_v22 = vpop.permute.xlu1 %608 }
 0xcb5   :  { %v611_v23 = vmul.f32 %v1100_v21, %v609_v22 }
 0xcb7   :  { %613 = vrot.lane.b32.xlu0 %v611_v23, %s1255_s5 }
 0xd29   :  { %v614_v25 = vpop.permute.xlu0 %613 }
 0xd2a   :  { %v616_v26 = vadd.f32 %v614_v25, %v606_v24 }
 0xd2c   :  { %1101 = vtanh.f32 %v616_v26 }
 0xd36   :  { %v1102_v15 = vpop.eup %1101 }
 0xd37   :  { %619 = vrot.lane.b32.xlu1 %v1102_v15, %s1251_s2 }
 0xda9   :  { %v620_v27 = vpop.permute.xlu1 %619 }
 0xdaa   :  { %v1470_v28 = vmul.f32 %v1100_v21, %v620_v27 }
 0xdac   :  { %v632_v29 = vpack.c.bf16 %v1470_v28, %v1470_v28 }
 0xdae   :  { %634 = vrot.lane.b32.xlu0 %v632_v29, %s1255_s5 }
 0xe20   :  { %v635_v30 = vpop.permute.xlu0 %634 }
 0xe21   :  { %1028 = vmatmul.mubr.msk.bf16.vlgmr.msra.gmra.mrb[12].mxu1 %vm81_vm2, %v635_v30 }
 0xe22   :  { %1040 = vmatpush3.bf16.msra.mxu1 %v1366_v8  ;;  %1043 = vmatprep.mubr.msk.bf16.mxu1 %vm1254_vm0, %v1253_v0 }
 0xe23   :  { %1041 = vmatprep.subr.bf16.mxu1 %v1253_v0 }
 0xe26   :  { %1042 = vmatpush3.bf16.msra.mxu1 %v1371_v10 }
 0xef4   :  { %v673_v32 = vpop.f32.mrb[12].mxu1 }
 0xef5   :  { %v679_v33 = vadd.f32 %v673_v32, %v631_v31  ;;  %v1029_v34 = vpop.f32.mrb[13].mxu1 }
 0xef6   :  { %v676_v35 = vpop.f32.mrb[14].mxu1 }
 0xef7   :  { %1103 = vtanh.f32 %v679_v33  ;;  %v1030_v36 = vpop.f32.mrb[15].mxu1  ;;  %v916_v38 = vmul.f32 -1.442695, %v679_v33 }
 0xef9   :  { %1105 = vpow2.f32 %v916_v38 }
 0xf01   :  { %v1104_v37 = vpop.eup %1103 }
 0xf02   :  { %689 = vrot.lane.b32.xlu1 %v1104_v37, %s1251_s2 }
 0xf03   :  { %v1106_v8 = vpop.eup %1105 }
 0xf04   :  { %v683_v39 = vadd.f32 1.0, %v1106_v8 }
 0xf06   :  { %1107 = vrcp.f32 %v683_v39 }
 0xf10   :  { %v1108_v40 = vpop.eup %1107 }
 0xf11   :  { %v687_v10 = vmul.f32 %v1108_v40, %v616_v26 }
 0xf74   :  { %v690_v41 = vpop.permute.xlu1 %689 }
 0xf75   :  { %v692_v0 = vmul.f32 %v1108_v40, %v690_v41 }
 0xf77   :  { %694 = vrot.lane.b32.xlu0 %v692_v0, %s1255_s5 }
 0xfe9   :  { %v695_v42 = vpop.permute.xlu0 %694 }
 0xfea   :  { %v697_v43 = vadd.f32 %v695_v42, %v687_v10 }
 0xfec   :  { %1109 = vtanh.f32 %v697_v43 }
 0xff6   :  { %v1110_v45 = vpop.eup %1109 }
 0xff7   :  { %700 = vrot.lane.b32.xlu1 %v1110_v45, %s1251_s2 }
0x1069   :  { %v701_v47 = vpop.permute.xlu1 %700 }
0x106a   :  { %v1484_v48 = vmul.f32 %v1108_v40, %v701_v47 }
0x106c   :  { %v713_v49 = vpack.c.bf16 %v1484_v48, %v1484_v48 }
0x106e   :  { %715 = vrot.lane.b32.xlu0 %v713_v49, %s1255_s5 }
0x10e0   :  { %v716_v50 = vpop.permute.xlu0 %715 }
0x10e1   :  { %1036 = vmatmul.mubr.msk.bf16.vlgmr.msra.gmra.mrb[16].mxu0 %vm81_vm2, %v716_v50 }
0x11b4   :  { %v754_v53 = vpop.f32.mrb[16].mxu0 }
0x11b5   :  { %v760_v54 = vadd.f32 %v754_v53, %v712_v52  ;;  %v1037_v55 = vpop.f32.mrb[17].mxu0 }
0x11b6   :  { %v757_v56 = vpop.f32.mrb[18].mxu0 }
0x11b7   :  { %1111 = vtanh.f32 %v760_v54  ;;  %v1038_v57 = vpop.f32.mrb[19].mxu0  ;;  %v918_v59 = vmul.f32 -1.442695, %v760_v54 }
0x11b9   :  { %1113 = vpow2.f32 %v918_v59 }
0x11c1   :  { %v1112_v58 = vpop.eup %1111 }
0x11c2   :  { %770 = vrot.lane.b32.xlu1 %v1112_v58, %s1251_s2 }
0x11c3   :  { %v1114_v60 = vpop.eup %1113 }
0x11c4   :  { %v764_v61 = vadd.f32 1.0, %v1114_v60 }
0x11c6   :  { %1115 = vrcp.f32 %v764_v61 }
0x11d0   :  { %v1116_v62 = vpop.eup %1115 }
0x11d1   :  { %v768_v2 = vmul.f32 %v1116_v62, %v697_v43 }
0x1234   :  { %v771_v63 = vpop.permute.xlu1 %770 }
0x1235   :  { %v773_v1 = vmul.f32 %v1116_v62, %v771_v63 }
0x1237   :  { %775 = vrot.lane.b32.xlu0 %v773_v1, %s1255_s5 }
0x12a9   :  { %v776_v4 = vpop.permute.xlu0 %775 }
0x12aa   :  { %v778_v5 = vadd.f32 %v776_v4, %v768_v2 }
0x12ac   :  { %1117 = vtanh.f32 %v778_v5 }
0x12b6   :  { %v1118_v6 = vpop.eup %1117 }
0x12b7   :  { %781 = vrot.lane.b32.xlu1 %v1118_v6, %s1251_s2 }
0x1329   :  { %v782_v7 = vpop.permute.xlu1 %781 }
0x132a   :  { %v784_v9 = vmul.f32 %v1116_v62, %v782_v7 }
0x132c   :  { %v794_v11 = vpack.c.bf16 %v784_v9, %v784_v9 }
0x132e   :  { %796 = vrot.lane.b32.xlu0 %v794_v11, %s1255_s5 }
0x13a0   :  { %v797_v13 = vpop.permute.xlu0 %796 }
0x13a1   :  { %1044 = vmatmul.mubr.msk.bf16.vlgmr.msra.gmra.mrb[16].mxu1 %vm81_vm2, %v797_v13 }
0x1474   :  { %v835_v16 = vpop.f32.mrb[16].mxu1 }
0x1475   :  { %v841_v17 = vadd.f32 %v835_v16, %v793_v14  ;;  %v1045_v18 = vpop.f32.mrb[17].mxu1 }
0x1476   :  { %v838_v19 = vpop.f32.mrb[18].mxu1 }
0x1477   :  { %1119 = vtanh.f32 %v841_v17  ;;  %v1046_v20 = vpop.f32.mrb[19].mxu1  ;;  %v920_v22 = vmul.f32 -1.442695, %v841_v17 }
0x1479   :  { %1121 = vpow2.f32 %v920_v22 }
0x1481   :  { %v1120_v21 = vpop.eup %1119 }
0x1482   :  { %851 = vrot.lane.b32.xlu1 %v1120_v21, %s1251_s2 }
0x1483   :  { %v1122_v23 = vpop.eup %1121 }
0x1484   :  { %v845_v24 = vadd.f32 1.0, %v1122_v23 }
0x1486   :  { %1123 = vrcp.f32 %v845_v24 }
0x1490   :  { %v1124_v25 = vpop.eup %1123 }
0x1491   :  { %v849_v27 = vmul.f32 %v1124_v25, %v778_v5 }
0x14f4   :  { %v852_v26 = vpop.permute.xlu1 %851 }
0x14f5   :  { %v854_v15 = vmul.f32 %v1124_v25, %v852_v26 }
0x14f7   :  { %856 = vrot.lane.b32.xlu0 %v854_v15, %s1255_s5 }
0x14fb   :  { %301 = vrot.lane.b32.xlu0 %v1403_v46, %s1255_s5 }
0x14ff   :  { %462 = vrot.lane.b32.xlu0 %v1441_v44, %s1255_s5 }
0x1503   :  { %624 = vrot.lane.b32.xlu0 %v1470_v28, %s1255_s5 }
0x1507   :  { %786 = vrot.lane.b32.xlu0 %v784_v9, %s1255_s5 }
0x1569   :  { %v857_v29 = vpop.permute.xlu0 %856 }
0x156a   :  { %v859_v30 = vadd.f32 %v857_v29, %v849_v27 }
0x156c   :  { %1125 = vtanh.f32 %v859_v30  ;;  %874 = vrot.lane.b32.xlu0 %v859_v30, %s1256_s26 }
0x156d   :  { %v302_v31 = vpop.permute.xlu0 %301 }
0x156e   :  { %304 = vst.msk [vmem:[#allocation13] sm:$0xff] %vm81_vm2, %v302_v31 }
0x1571   :  { %v463_v32 = vpop.permute.xlu0 %462 }
0x1572   :  { %466 = vst.msk [vmem:[#allocation13 + $0x10] sm:$0xff] %vm81_vm2, %v463_v32 }
0x1575   :  { %v625_v46 = vpop.permute.xlu0 %624 }
0x1576   :  { %v1126_v33 = vpop.eup %1125  ;;  %628 = vst.msk [vmem:[#allocation13 + $0x20] sm:$0xff] %vm81_vm2, %v625_v46 }
0x1577   :  { %862 = vrot.lane.b32.xlu1 %v1126_v33, %s1251_s2 }
0x1579   :  { %v787_v44 = vpop.permute.xlu0 %786 }
0x157a   :  { %790 = vst.msk [vmem:[#allocation13 + $0x30] sm:$0xff] %vm81_vm2, %v787_v44 }
0x157b   :  { %381 = vrot.lane.b32.xlu1 %v1422_v12, %s1255_s5 }
0x157f   :  { %543 = vrot.lane.b32.xlu1 %v1456_v3, %s1255_s5 }
0x1583   :  { %705 = vrot.lane.b32.xlu1 %v1484_v48, %s1255_s5 }
0x15de   :  { %v875_v28 = vpop.permute.xlu0 %874 }
0x15df   :  { %877 = vst.msk [vmem:[#allocation3] sm:$0xff] %vm81_vm2, %v875_v28 }
0x15e9   :  { %v863_v34 = vpop.permute.xlu1 %862 }
0x15ea   :  { %v865_v35 = vmul.f32 %v1124_v25, %v863_v34 }
0x15ec   :  { %867 = vrot.lane.b32.xlu1 %v865_v35, %s1255_s5 }
0x15ed   :  { %v382_v36 = vpop.permute.xlu1 %381 }
0x15ee   :  { %385 = vst.msk [vmem:[#allocation13 + $0x8] sm:$0xff] %vm81_vm2, %v382_v36 }
0x15f1   :  { %v544_v37 = vpop.permute.xlu1 %543 }
0x15f2   :  { %547 = vst.msk [vmem:[#allocation13 + $0x18] sm:$0xff] %vm81_vm2, %v544_v37 }
0x15f5   :  { %v706_v12 = vpop.permute.xlu1 %705 }
0x15f6   :  { %709 = vst.msk [vmem:[#allocation13 + $0x28] sm:$0xff] %vm81_vm2, %v706_v12 }
0x165e   :  { %v868_v3 = vpop.permute.xlu1 %867 }
0x165f   :  { %871 = vst.msk [vmem:[#allocation13 + $0x38] sm:$0xff] %vm81_vm2, %v868_v3  ;;  %872 = vst.msk [vmem:[#allocation2] sm:$0xff] %vm81_vm2, %v868_v3 }
0x1660   :  { %1226 = shalt.err (!%p1223_p8)
}
0x1661   :  { %s1227_s8 = scalar_lea.hbm %s1543_s6, 1024 }
0x1662   :  { %p1228_p9 = scmp.ne.s32.totalorder %s1543_s6, %s1227_s8  ;;  %p1231_p10 = scmp.lt.u32.totalorder %s1227_s8, %s1543_s6 }
0x1664   :  { %p1233_p11 = pnand %p1231_p10, %p1228_p9 }
0x1666   :  { %1236 = shalt.err (!%p1233_p11)
}
0x1667   :  { %889 = dma.vmem_to_hbm [thread:$0]  %s884_s28, 1024, %s1543_s6, [#allocation7], %s1247_s1, %s1247_s1, %s1248_s19  }
0x1668   :  { %1243 = dma.done.wait [#allocation7], 1024  }
0x1669   :  { %1244 = vsyncadd [#allocation7], 4294966272 }
0x166a   :  { %893 = vsyncpa [#allocation6], 1 }
0x166b   :  { %894 = vsyncpa [#allocation9], 1 }
0x166c   :  { %895 = vsyncpa [#allocation12], 1 }
0x166d   :  { %896 = vsyncpa [#allocation7], 1 }

</bundles_post_ra>
